<compile_context>
chip_gen: v7x
topology: tpu7x:2x2x1
jax: 0.10.0
libtpu: 0.0.40
codegen_flags: <defaults>
</compile_context>

<pallas_src>
import functools

import jax
import jax.numpy as jnp
from jax import lax
from jax.experimental import pallas as pl
from jax.experimental.pallas import tpu as pltpu


def _round_up(n, m):
    return ((n + m - 1) // m) * m


def _bl_kernel(mean_ref, xt_ref, wp_ref, bp_ref, sel_ref, gamma_ref, beta_ref,
               w4t_ref, b4_ref, out_ref, *, hid, hid2, k):
    xt = xt_ref[...]                                             # (in_, TB)

    # ---- fused x-projection [fc11^T ; cla^T ; (fc12@fc3)^T]: one MXU push ----
    proj = (jnp.dot(wp_ref[...], xt, preferred_element_type=jnp.float32)
            + bp_ref[...])                                       # (2*hid+hid2, TB)
    long_ = proj[0:hid, :]
    cla_z = proj[hid:2 * hid, :]
    short2 = proj[2 * hid:2 * hid + hid2, :]

    # ---- long_cla_module ----
    long_ = jnp.maximum(long_, 0.1 * long_)                      # LeakyReLU(0.1)
    # TODO(synk): nn.Dropout(p=0.35) implemented as identity (inference semantics).
    cla = 0.5 * (jnp.tanh(0.5 * cla_z) + 1.0)                    # sigmoid, EUP-only
    al = long_ * cla                                             # (hid, TB)

    # ---- MaxPool1d(kernel=stride=k) over the feature (sublane) axis ----
    # One 0/1 selection matmul (MXU has slack) + (k-1) lane-dense VPU max ops.
    pooled = jnp.dot(sel_ref[...], al,
                     preferred_element_type=jnp.float32)         # (k*hid2, TB)
    maxp = pooled[0:hid2, :]
    for g in range(1, k):
        maxp = jnp.maximum(maxp, pooled[g * hid2:(g + 1) * hid2, :])

    # ---- short_cla_module (fc3 folded into the projection) ----
    # Global (whole-batch) mean of short2, precomputed in the wrapper (SMEM).
    cust = jnp.tanh(short2 - mean_ref[0, 0]) * short2            # (hid2, TB)
    # LayerNorm over the feature (sublane) axis, eps=1e-5, one-pass variance.
    mu = jnp.mean(cust, axis=0, keepdims=True)                   # (1, TB)
    var = jnp.mean(cust * cust, axis=0, keepdims=True) - mu * mu
    cust = (cust - mu) * lax.rsqrt(var + 1e-5) * gamma_ref[...] + beta_ref[...]

    # ---- output projection: (out_, TB) — fully lane-dense, unmasked store ----
    out_ref[...] = (jnp.dot(w4t_ref[...], cust * maxp,
                            preferred_element_type=jnp.float32) + b4_ref[...])


def bl_forward(x, params, tb_max=2048, vmem_limit_bytes=None):
    B, in_ = x.shape
    hid, hid2, k = params["hid"], params["hid2"], params["k"]
    out_ = params["w4t"].shape[0]

    # torch.mean(short2) is a GLOBAL batch mean.  Pre-reduce it here (exact by
    # linearity of the affine layers) so batch tiling keeps semantics intact.
    x_mean = jnp.mean(x, axis=0, keepdims=True)                  # (1, in_)
    mean_s2 = jnp.mean(x_mean @ params["w3f"] + params["b3f"]
                       ).reshape(1, 1).astype(jnp.float32)

    # Batch tile on the lane axis (multiple of 128).  Prefer >=2 grid steps for
    # larger batches so the "parallel" axis can span both v7x TensorCores.
    if B <= 256:
        TB = _round_up(B, 128)
    else:
        TB = min(tb_max, _round_up((B + 1) // 2, 128))
    Bp = _round_up(B, TB)

    x_t = x.T                                                    # (in_, B)
    if Bp != B:
        x_t = jnp.pad(x_t, ((0, 0), (0, Bp - B)))
    grid = (Bp // TB,)

    kernel = functools.partial(_bl_kernel, hid=hid, hid2=hid2, k=k)

    def resident(shape):
        return pl.BlockSpec(shape, lambda i: (0, 0))

    out_t = pl.pallas_call(
        kernel,
        out_shape=jax.ShapeDtypeStruct((out_, Bp), jnp.float32),
        grid=grid,
        in_specs=[
            pl.BlockSpec(memory_space=pltpu.MemorySpace.SMEM),   # global mean scalar
            pl.BlockSpec((in_, TB), lambda i: (0, i)),           # x^T (streamed)
            resident((2 * hid + hid2, in_)),                     # fused projection W^T
            resident((2 * hid + hid2, 1)),                       # fused bias column
            resident((k * hid2, hid)),                           # maxpool 0/1 selectors
            resident((hid2, 1)),                                 # layer_norm gamma
            resident((hid2, 1)),                                 # layer_norm beta
            resident((out_, hid2)),                              # fc4 W^T
            resident((out_, 1)),                                 # fc4 bias column
        ],
        out_specs=pl.BlockSpec((out_, TB), lambda i: (0, i)),
        compiler_params=pltpu.CompilerParams(
            dimension_semantics=("parallel",),
            vmem_limit_bytes=vmem_limit_bytes),
    )(mean_s2, x_t, params["wp"], params["bp"], params["sel"],
      params["gamma_c"], params["beta_c"], params["w4t"], params["b4c"])

    return out_t[:, :B].T                                        # (B, out_)


def make_params(key, in_, hid, hid2, out_):
    ks = jax.random.split(key, 10)
    s = 0.1
    w11 = jax.random.normal(ks[0], (in_, hid), jnp.float32) * s
    b11 = jax.random.normal(ks[1], (1, hid), jnp.float32) * s    # Linear bias + fc11_b(=0)
    wcla = jax.random.normal(ks[2], (in_, hid), jnp.float32) * s
    bcla = jax.random.normal(ks[3], (1, hid), jnp.float32) * s   # + cla_b(=0)
    w12 = jax.random.normal(ks[4], (in_, hid), jnp.float32) * s
    b12 = jax.random.normal(ks[5], (1, hid), jnp.float32) * s    # + fc12_b(=0)
    w3 = jax.random.normal(ks[6], (hid, hid2), jnp.float32) * s
    b3 = jax.random.normal(ks[7], (1, hid2), jnp.float32) * s    # + fc3_b(=0)
    w4 = jax.random.normal(ks[8], (hid2, out_), jnp.float32) * s
    b4 = jax.random.normal(ks[9], (1, out_), jnp.float32) * s
    gamma = jnp.ones((1, hid2), jnp.float32)                      # LayerNorm default affine
    beta = jnp.zeros((1, hid2), jnp.float32)

    k = hid // hid2
    assert hid == k * hid2, "MaxPool1d selection assumes hid == k * hid2"

    # fc3 folded into the x-projection (exact by linearity).
    w3f = w12 @ w3                                                # (in_, hid2)
    b3f = b12 @ w3 + b3                                           # (1, hid2)

    # Transposed (feature-major) fused projection: rows = [fc11^T ; cla^T ; w3f^T].
    wp = jnp.concatenate([w11.T, wcla.T, w3f.T], axis=0)          # (2*hid+hid2, in_)
    bp = jnp.concatenate([b11, bcla, b3f], axis=1).T              # (2*hid+hid2, 1)

    # MaxPool1d(kernel=stride=k) 0/1 selectors, one group per pooling offset.
    col = jnp.arange(hid)[None, :]
    sel = jnp.concatenate(
        [(jnp.arange(hid2)[:, None] * k + g == col).astype(jnp.float32)
         for g in range(k)], axis=0)                              # (k*hid2, hid)

    return dict(
        # raw (already W^T vs PyTorch) weights, used by the pure-JAX reference
        w11=w11, b11=b11, wcla=wcla, bcla=bcla, w12=w12, b12=b12,
        w3=w3, b3=b3, w4=w4, b4=b4, gamma=gamma, beta=beta,
        # kernel-layout params
        wp=wp, bp=bp, sel=sel, w3f=w3f, b3f=b3f,
        gamma_c=gamma.T, beta_c=beta.T, w4t=w4.T, b4c=b4.T,
        hid=hid, hid2=hid2, k=k)


def bl_reference(x, params):
    """Pure-JAX reference matching the PyTorch forward (eval mode)."""
    w11, b11 = params["w11"], params["b11"]
    wcla, bcla = params["wcla"], params["bcla"]
    w12, b12 = params["w12"], params["b12"]
    w3, b3 = params["w3"], params["b3"]
    w4, b4 = params["w4"], params["b4"]
    gamma, beta = params["gamma"], params["beta"]
    k = params["k"]
    long_ = x @ w11 + b11
    long_ = jnp.where(long_ >= 0, long_, 0.1 * long_)
    cla = jax.nn.sigmoid(x @ wcla + bcla)
    al = long_ * cla
    short2 = (x @ w12 + b12) @ w3 + b3
    cust = jnp.tanh(short2 - jnp.mean(short2)) * short2
    mu = jnp.mean(cust, axis=-1, keepdims=True)
    var = jnp.mean((cust - mu) ** 2, axis=-1, keepdims=True)
    cust = (cust - mu) / jnp.sqrt(var + 1e-5) * gamma + beta
    B, hid = al.shape
    maxp = jnp.max(al.reshape(B, hid // k, k), axis=-1)
    return (cust * maxp) @ w4 + b4


if __name__ == "__main__":
    B, in_, hid, hid2, out_ = 8, 16, 64, 32, 8
    key = jax.random.PRNGKey(0)
    kx, kp = jax.random.split(key)
    x = jax.random.normal(kx, (B, in_), jnp.float32)
    params = make_params(kp, in_, hid, hid2, out_)

    out = bl_forward(x, params)
    out = jax.block_until_ready(out)

    ref = bl_reference(x, params)
    assert out.shape == (B, out_)
    assert jnp.allclose(out, ref, atol=1e-4, rtol=1e-4), (
        f"max abs diff {jnp.max(jnp.abs(out - ref))}")
    print("KERNEL_OK")
</pallas_src>

<mosaic_0001>
module attributes {stable_mosaic.version = 11 : i64} {
  func.func @_bl_kernel(%arg0: i32, %arg1: memref<1x1xf32, #tpu.memory_space<smem>>, %arg2: memref<16x128xf32, #tpu.memory_space<vmem>>, %arg3: memref<160x16xf32, #tpu.memory_space<vmem>>, %arg4: memref<160x1xf32, #tpu.memory_space<vmem>>, %arg5: memref<64x64xf32, #tpu.memory_space<vmem>>, %arg6: memref<32x1xf32, #tpu.memory_space<vmem>>, %arg7: memref<32x1xf32, #tpu.memory_space<vmem>>, %arg8: memref<8x32xf32, #tpu.memory_space<vmem>>, %arg9: memref<8x1xf32, #tpu.memory_space<vmem>>, %arg10: memref<8x128xf32, #tpu.memory_space<vmem>>) attributes {dimension_semantics = [#tpu.dimension_semantics<parallel>], iteration_bounds = array<i64: 1>, scalar_prefetch = 0 : i64, scratch_operands = 0 : i64, tpu.core_type = #tpu.core_type<tc>, window_params = [{transform_indices = @transform_0, window_bounds = array<i64: 1, 1>}, {transform_indices = @transform_1, window_bounds = array<i64: 16, 128>}, {pipeline_mode = #tpu.pipeline_mode<synchronous>, transform_indices = @transform_2, window_bounds = array<i64: 160, 16>}, {pipeline_mode = #tpu.pipeline_mode<synchronous>, transform_indices = @transform_3, window_bounds = array<i64: 160, 1>}, {pipeline_mode = #tpu.pipeline_mode<synchronous>, transform_indices = @transform_4, window_bounds = array<i64: 64, 64>}, {pipeline_mode = #tpu.pipeline_mode<synchronous>, transform_indices = @transform_5, window_bounds = array<i64: 32, 1>}, {pipeline_mode = #tpu.pipeline_mode<synchronous>, transform_indices = @transform_6, window_bounds = array<i64: 32, 1>}, {pipeline_mode = #tpu.pipeline_mode<synchronous>, transform_indices = @transform_7, window_bounds = array<i64: 8, 32>}, {pipeline_mode = #tpu.pipeline_mode<synchronous>, transform_indices = @transform_8, window_bounds = array<i64: 8, 1>}, {transform_indices = @transform_9, window_bounds = array<i64: 8, 128>}]} {
    %c0 = arith.constant 0 : index
    %c0_0 = arith.constant 0 : index
    %0 = vector.load %arg2[%c0, %c0_0] : memref<16x128xf32, #tpu.memory_space<vmem>>, vector<16x128xf32>
    %c0_1 = arith.constant 0 : index
    %c0_2 = arith.constant 0 : index
    %1 = vector.load %arg3[%c0_1, %c0_2] : memref<160x16xf32, #tpu.memory_space<vmem>>, vector<160x16xf32>
    %cst = arith.constant dense<0.000000e+00> : vector<160x128xf32>
    %2 = tpu.matmul %1, %0, %cst {dimension_numbers = #tpu.dot_dimension_numbers<[1], [0], [0], [1], [0, 0, 1, 1], [], []>} : vector<160x16xf32>, vector<16x128xf32>, vector<160x128xf32> -> vector<160x128xf32>
    %c0_3 = arith.constant 0 : index
    %c0_4 = arith.constant 0 : index
    %3 = vector.load %arg4[%c0_3, %c0_4] : memref<160x1xf32, #tpu.memory_space<vmem>>, vector<160x1xf32>
    %4 = vector.broadcast %3 : vector<160x1xf32> to vector<160x128xf32>
    %5 = arith.addf %2, %4 : vector<160x128xf32>
    %6 = vector.extract_strided_slice %5 {offsets = [0, 0], sizes = [64, 128], strides = [1, 1]} : vector<160x128xf32> to vector<64x128xf32>
    %7 = vector.extract_strided_slice %5 {offsets = [64, 0], sizes = [64, 128], strides = [1, 1]} : vector<160x128xf32> to vector<64x128xf32>
    %8 = vector.extract_strided_slice %5 {offsets = [128, 0], sizes = [32, 128], strides = [1, 1]} : vector<160x128xf32> to vector<32x128xf32>
    %cst_5 = arith.constant 1.000000e-01 : f32
    %9 = vector.broadcast %cst_5 : f32 to vector<64x128xf32>
    %10 = arith.mulf %9, %6 : vector<64x128xf32>
    %11 = arith.maximumf %6, %10 : vector<64x128xf32>
    %cst_6 = arith.constant 5.000000e-01 : f32
    %12 = vector.broadcast %cst_6 : f32 to vector<64x128xf32>
    %13 = arith.mulf %12, %7 : vector<64x128xf32>
    %14 = math.tanh %13 : vector<64x128xf32>
    %cst_7 = arith.constant 1.000000e+00 : f32
    %15 = vector.broadcast %cst_7 : f32 to vector<64x128xf32>
    %16 = arith.addf %14, %15 : vector<64x128xf32>
    %cst_8 = arith.constant 5.000000e-01 : f32
    %17 = vector.broadcast %cst_8 : f32 to vector<64x128xf32>
    %18 = arith.mulf %17, %16 : vector<64x128xf32>
    %19 = arith.mulf %11, %18 : vector<64x128xf32>
    %c0_9 = arith.constant 0 : index
    %c0_10 = arith.constant 0 : index
    %20 = vector.load %arg5[%c0_9, %c0_10] : memref<64x64xf32, #tpu.memory_space<vmem>>, vector<64x64xf32>
    %cst_11 = arith.constant dense<0.000000e+00> : vector<64x128xf32>
    %21 = tpu.matmul %20, %19, %cst_11 {dimension_numbers = #tpu.dot_dimension_numbers<[1], [0], [0], [1], [0, 0, 1, 1], [], []>} : vector<64x64xf32>, vector<64x128xf32>, vector<64x128xf32> -> vector<64x128xf32>
    %22 = vector.extract_strided_slice %21 {offsets = [0, 0], sizes = [32, 128], strides = [1, 1]} : vector<64x128xf32> to vector<32x128xf32>
    %23 = vector.extract_strided_slice %21 {offsets = [32, 0], sizes = [32, 128], strides = [1, 1]} : vector<64x128xf32> to vector<32x128xf32>
    %24 = arith.maximumf %22, %23 : vector<32x128xf32>
    %c0_12 = arith.constant 0 : index
    %c0_13 = arith.constant 0 : index
    %25 = memref.load %arg1[%c0_12, %c0_13] : memref<1x1xf32, #tpu.memory_space<smem>>
    %26 = vector.broadcast %25 : f32 to vector<32x128xf32>
    %27 = arith.subf %8, %26 : vector<32x128xf32>
    %28 = math.tanh %27 : vector<32x128xf32>
    %29 = arith.mulf %28, %8 : vector<32x128xf32>
    %cst_14 = arith.constant dense<0.000000e+00> : vector<128xf32>
    %30 = vector.multi_reduction <add>, %29, %cst_14 [0] : vector<32x128xf32> to vector<128xf32>
    %31 = vector.shape_cast %30 : vector<128xf32> to vector<1x128xf32>
    %cst_15 = arith.constant 3.200000e+01 : f32
    %32 = vector.broadcast %cst_15 : f32 to vector<1x128xf32>
    %33 = arith.divf %31, %32 : vector<1x128xf32>
    %34 = arith.mulf %29, %29 : vector<32x128xf32>
    %cst_16 = arith.constant dense<0.000000e+00> : vector<128xf32>
    %35 = vector.multi_reduction <add>, %34, %cst_16 [0] : vector<32x128xf32> to vector<128xf32>
    %36 = vector.shape_cast %35 : vector<128xf32> to vector<1x128xf32>
    %cst_17 = arith.constant 3.200000e+01 : f32
    %37 = vector.broadcast %cst_17 : f32 to vector<1x128xf32>
    %38 = arith.divf %36, %37 : vector<1x128xf32>
    %39 = arith.mulf %33, %33 : vector<1x128xf32>
    %40 = arith.subf %38, %39 : vector<1x128xf32>
    %41 = vector.broadcast %33 : vector<1x128xf32> to vector<32x128xf32>
    %42 = arith.subf %29, %41 : vector<32x128xf32>
    %cst_18 = arith.constant 9.99999974E-6 : f32
    %43 = vector.broadcast %cst_18 : f32 to vector<1x128xf32>
    %44 = arith.addf %40, %43 : vector<1x128xf32>
    %45 = math.rsqrt %44 : vector<1x128xf32>
    %46 = vector.broadcast %45 : vector<1x128xf32> to vector<32x128xf32>
    %47 = arith.mulf %42, %46 : vector<32x128xf32>
    %c0_19 = arith.constant 0 : index
    %c0_20 = arith.constant 0 : index
    %48 = vector.load %arg6[%c0_19, %c0_20] : memref<32x1xf32, #tpu.memory_space<vmem>>, vector<32x1xf32>
    %49 = vector.broadcast %48 : vector<32x1xf32> to vector<32x128xf32>
    %50 = arith.mulf %47, %49 : vector<32x128xf32>
    %c0_21 = arith.constant 0 : index
    %c0_22 = arith.constant 0 : index
    %51 = vector.load %arg7[%c0_21, %c0_22] : memref<32x1xf32, #tpu.memory_space<vmem>>, vector<32x1xf32>
    %52 = vector.broadcast %51 : vector<32x1xf32> to vector<32x128xf32>
    %53 = arith.addf %50, %52 : vector<32x128xf32>
    %c0_23 = arith.constant 0 : index
    %c0_24 = arith.constant 0 : index
    %54 = vector.load %arg8[%c0_23, %c0_24] : memref<8x32xf32, #tpu.memory_space<vmem>>, vector<8x32xf32>
    %55 = arith.mulf %53, %24 : vector<32x128xf32>
    %cst_25 = arith.constant dense<0.000000e+00> : vector<8x128xf32>
    %56 = tpu.matmul %54, %55, %cst_25 {dimension_numbers = #tpu.dot_dimension_numbers<[1], [0], [0], [1], [0, 0, 1, 1], [], []>} : vector<8x32xf32>, vector<32x128xf32>, vector<8x128xf32> -> vector<8x128xf32>
    %c0_26 = arith.constant 0 : index
    %c0_27 = arith.constant 0 : index
    %57 = vector.load %arg9[%c0_26, %c0_27] : memref<8x1xf32, #tpu.memory_space<vmem>>, vector<8x1xf32>
    %58 = vector.broadcast %57 : vector<8x1xf32> to vector<8x128xf32>
    %59 = arith.addf %56, %58 : vector<8x128xf32>
    %c0_28 = arith.constant 0 : index
    %c0_29 = arith.constant 0 : index
    %60 = vector.load %arg10[%c0_28, %c0_29] : memref<8x128xf32, #tpu.memory_space<vmem>>, vector<8x128xf32>
    tpu.vector_store %arg10[%c0_28, %c0_29], %59 {strides = array<i32>} : memref<8x128xf32, #tpu.memory_space<vmem>>, vector<8x128xf32>,
    return
  }
  func.func @transform_0(%arg0: i32) -> (i32, i32) {
    %c0_i32 = arith.constant 0 : i32
    %c0_i32_0 = arith.constant 0 : i32
    %c0_i32_1 = arith.constant 0 : i32
    return %c0_i32, %c0_i32_0 : i32, i32
  }
  func.func @transform_1(%arg0: i32) -> (i32, i32) {
    %c0_i32 = arith.constant 0 : i32
    %c0_i32_0 = arith.constant 0 : i32
    return %c0_i32, %arg0 : i32, i32
  }
  func.func @transform_2(%arg0: i32) -> (i32, i32) {
    %c0_i32 = arith.constant 0 : i32
    %c0_i32_0 = arith.constant 0 : i32
    %c0_i32_1 = arith.constant 0 : i32
    return %c0_i32, %c0_i32_0 : i32, i32
  }
  func.func @transform_3(%arg0: i32) -> (i32, i32) {
    %c0_i32 = arith.constant 0 : i32
    %c0_i32_0 = arith.constant 0 : i32
    %c0_i32_1 = arith.constant 0 : i32
    return %c0_i32, %c0_i32_0 : i32, i32
  }
  func.func @transform_4(%arg0: i32) -> (i32, i32) {
    %c0_i32 = arith.constant 0 : i32
    %c0_i32_0 = arith.constant 0 : i32
    %c0_i32_1 = arith.constant 0 : i32
    return %c0_i32, %c0_i32_0 : i32, i32
  }
  func.func @transform_5(%arg0: i32) -> (i32, i32) {
    %c0_i32 = arith.constant 0 : i32
    %c0_i32_0 = arith.constant 0 : i32
    %c0_i32_1 = arith.constant 0 : i32
    return %c0_i32, %c0_i32_0 : i32, i32
  }
  func.func @transform_6(%arg0: i32) -> (i32, i32) {
    %c0_i32 = arith.constant 0 : i32
    %c0_i32_0 = arith.constant 0 : i32
    %c0_i32_1 = arith.constant 0 : i32
    return %c0_i32, %c0_i32_0 : i32, i32
  }
  func.func @transform_7(%arg0: i32) -> (i32, i32) {
    %c0_i32 = arith.constant 0 : i32
    %c0_i32_0 = arith.constant 0 : i32
    %c0_i32_1 = arith.constant 0 : i32
    return %c0_i32, %c0_i32_0 : i32, i32
  }
  func.func @transform_8(%arg0: i32) -> (i32, i32) {
    %c0_i32 = arith.constant 0 : i32
    %c0_i32_0 = arith.constant 0 : i32
    %c0_i32_1 = arith.constant 0 : i32
    return %c0_i32, %c0_i32_0 : i32, i32
  }
  func.func @transform_9(%arg0: i32) -> (i32, i32) {
    %c0_i32 = arith.constant 0 : i32
    %c0_i32_0 = arith.constant 0 : i32
    return %c0_i32, %arg0 : i32, i32
  }
}

</mosaic_0001>

<bundles_post_ra>
// kernel: tpu_custom_call.1
= control target key start
LH: loop header
LB: loop body
LE: loop exit
PB: predicated region body
PF: predicated region fallthrough
CT: control target
= control target key end

     0   :  { %vm176_vm0 = vcmask 130048   ;;  %v1035_v4 = vmov 0   ;;  %s1345_s0 = inlined_call_operand.<no memory space> [shape: f32[1,1], index: 0, kind: input, shape index: {}]   ;;  %s1346_s1 = inlined_call_operand.vmem [shape: f32[16,128], index: 1, kind: input, shape index: {}]   ;;  %s1347_s2 = inlined_call_operand.vmem [shape: f32[160,16], index: 2, kind: input, shape index: {}]   ;;  %s1348_s3 = inlined_call_operand.vmem [shape: f32[160,1], index: 3, kind: input, shape index: {}]   ;;  %s1349_s4 = inlined_call_operand.vmem [shape: f32[64,64], index: 4, kind: input, shape index: {}]   ;;  %s1350_s5 = inlined_call_operand.vmem [shape: f32[32,1], index: 5, kind: input, shape index: {}]   ;;  %s1351_s6 = inlined_call_operand.vmem [shape: f32[32,1], index: 6, kind: input, shape index: {}]   ;;  %s1352_s7 = inlined_call_operand.vmem [shape: f32[8,32], index: 7, kind: input, shape index: {}]   ;;  %s1353_s8 = inlined_call_operand.vmem [shape: f32[8,1], index: 8, kind: input, shape index: {}]   ;;  %s1354_s9 = inlined_call_operand.hbm [shape: f32[8,128], index: 9, kind: output, shape index: {}]  }
   0x1   :  { %v34_v0 = vld [vmem:[%s1346_s1] sm:$0xff]  ;;  %v35_v1 = vld [vmem:[%s1346_s1 + $0x8] sm:$0xff]  ;;  %983 = vset.pattern.permute.xlu0 %v1035_v4  ;;  %984 = vset.pattern.permute.xlu1 %v1035_v4  ;;  %v38_v6 = vld [vmem:[%s1347_s2 + $0x10] sm:$0xff] }
   0x2   :  { %v36_v2 = vld [vmem:[%s1347_s2] sm:$0xff]  ;;  %v952_v3 = vpack.c.bf16 %v35_v1, %v34_v0  ;;  %v37_v5 = vld [vmem:[%s1347_s2 + $0x8] sm:$0xff]  ;;  %v39_v8 = vld [vmem:[%s1347_s2 + $0x18] sm:$0xff] }
   0x3   :  { %883 = vmatprep.mubr.msk.f32.mxu0 %vm176_vm0, %v36_v2  ;;  %v64_v7 = vld [vmem:[%s1348_s3 + $0x40] sm:$0xff]  ;;  %v66_v9 = vld [vmem:[%s1348_s3 + $0x50] sm:$0xff]  ;;  %v65_v11 = vld [vmem:[%s1348_s3 + $0x48] sm:$0xff] }
   0x4   :  { %953 = vmatprep.subr.bf16.mxu0 %v952_v3  ;;  %118 = vperm.xlu0 %983, %v64_v7   ;;  %v40_v10 = vld [vmem:[%s1347_s2 + $0x20] sm:$0xff]  ;;  %v67_v12 = vld [vmem:[%s1348_s3 + $0x58] sm:$0xff]  ;;  %v41_v13 = vld [vmem:[%s1347_s2 + $0x28] sm:$0xff] }
   0x5   :  { %955 = vmatpush3.bf16.msra.mxu0 %v952_v3  ;;  %128 = vperm.xlu1 %984, %v66_v9   ;;  %v42_v14 = vld [vmem:[%s1347_s2 + $0x30] sm:$0xff]  ;;  %v68_v15 = vld [vmem:[%s1348_s3 + $0x60] sm:$0xff]  ;;  %v69_v16 = vld [vmem:[%s1348_s3 + $0x68] sm:$0xff] }
   0x6   :  { %v43_v17 = vld [vmem:[%s1347_s2 + $0x38] sm:$0xff]  ;;  %v44_v18 = vld [vmem:[%s1347_s2 + $0x40] sm:$0xff]  ;;  %v70_v19 = vld [vmem:[%s1348_s3 + $0x70] sm:$0xff] }
   0x8   :  { %884 = vmatmul.mubr.msk.f32.vlgmr.msra.gmra.mrb[0].mxu0 %vm176_vm0, %v37_v5  ;;  %123 = vperm.xlu0 %983, %v65_v11  }
   0x9   :  { %886 = vmatprep.mubr.msk.f32.mxu0 %vm176_vm0, %v38_v6  ;;  %133 = vperm.xlu1 %984, %v67_v12  }
   0xc   :  { %887 = vmatmul.mubr.msk.f32.gmra.mrb[2].mxu0 %vm176_vm0, %v39_v8  ;;  %138 = vperm.xlu0 %983, %v68_v15  }
   0xd   :  { %889 = vmatprep.mubr.msk.f32.mxu0 %vm176_vm0, %v40_v10  ;;  %143 = vperm.xlu1 %984, %v69_v16  }
  0x10   :  { %890 = vmatmul.mubr.msk.f32.gmra.mrb[4].mxu0 %vm176_vm0, %v41_v13 }
  0x11   :  { %892 = vmatprep.mubr.msk.f32.mxu0 %vm176_vm0, %v42_v14 }
  0x12   :  { %15 = vsyncpa [#allocation4], 0  ;;  %v71_v20 = vld [vmem:[%s1348_s3 + $0x78] sm:$0xff]  ;;  %v45_v21 = vld [vmem:[%s1347_s2 + $0x48] sm:$0xff]  ;;  %148 = vperm.xlu0 %983, %v70_v19   ;;  %vm466_vm1 = vcmask 523264   ;;  %vm1037_vm2 = vmmov 0  }
  0x13   :  { %v46_v22 = vld [vmem:[%s1347_s2 + $0x50] sm:$0xff]  ;;  %v56_v23 = vld [vmem:[%s1348_s3] sm:$0xff]  ;;  %153 = vperm.xlu1 %984, %v71_v20   ;;  %v57_v24 = vld [vmem:[%s1348_s3 + $0x8] sm:$0xff]  ;;  %vm718_vm3 = vcmask 261120   ;;  %s1039_s12 = smov [#allocation3]  }
  0x14   :  { %893 = vmatmul.mubr.msk.f32.gmra.mrb[6].mxu0 %vm176_vm0, %v43_v17  ;;  %v47_v25 = vld [vmem:[%s1347_s2 + $0x58] sm:$0xff]  ;;  %v48_v26 = vld [vmem:[%s1347_s2 + $0x60] sm:$0xff]  ;;  %v58_v27 = vld [vmem:[%s1348_s3 + $0x10] sm:$0xff]  ;;  %s799_s13 = sshll.u32 %s1039_s12, 4  ;;  %s800_s13 = int_to_ptr.vmem [resolvable:$true] %s799_s13 }
  0x15   :  { %895 = vmatprep.mubr.msk.f32.mxu0 %vm176_vm0, %v44_v18  ;;  %v59_v28 = vld [vmem:[%s1348_s3 + $0x18] sm:$0xff]  ;;  %v49_v29 = vld [vmem:[%s1347_s2 + $0x68] sm:$0xff]  ;;  %v50_v30 = vld [vmem:[%s1347_s2 + $0x70] sm:$0xff]  ;;  %s1011_s14 = scalar_lea.vmem %s800_s13, 128  ;;  %p1016_p1 = scmp.lt.s32.totalorder %s800_s13, %s800_s13 }
  0x16   :  { %78 = vperm.xlu0 %983, %v56_v23   ;;  %v60_v31 = vld [vmem:[%s1348_s3 + $0x20] sm:$0xff]  ;;  %v61_v32 = vld [vmem:[%s1348_s3 + $0x28] sm:$0xff]  ;;  %v51_v33 = vld [vmem:[%s1347_s2 + $0x78] sm:$0xff]  ;;  %p1012_p0 = scmp.ne.s32.totalorder %s800_s13, %s1011_s14  ;;  %p1017_p2 = scmp.lt.s32.totalorder %s1011_s14, %s1011_s14 }
  0x17   :  { %83 = vperm.xlu1 %984, %v57_v24   ;;  %v52_v34 = vld [vmem:[%s1347_s2 + $0x80] sm:$0xff]  ;;  %v62_v35 = vld [vmem:[%s1348_s3 + $0x30] sm:$0xff]  ;;  %v63_v36 = vld [vmem:[%s1348_s3 + $0x38] sm:$0xff] }
  0x18   :  { %896 = vmatmul.mubr.msk.f32.gmra.mrb[8].mxu0 %vm176_vm0, %v45_v21  ;;  %v53_v37 = vld [vmem:[%s1347_s2 + $0x88] sm:$0xff]  ;;  %v54_v38 = vld [vmem:[%s1347_s2 + $0x90] sm:$0xff]  ;;  %v72_v39 = vld [vmem:[%s1348_s3 + $0x80] sm:$0xff]  ;;  %p1018_p3 = por %p1017_p2, %p1016_p1 }
  0x19   :  { %898 = vmatprep.mubr.msk.f32.mxu0 %vm176_vm0, %v46_v22  ;;  %v73_v40 = vld [vmem:[%s1348_s3 + $0x88] sm:$0xff]  ;;  %v55_v41 = vld [vmem:[%s1347_s2 + $0x98] sm:$0xff]  ;;  %v74_v42 = vld [vmem:[%s1348_s3 + $0x90] sm:$0xff] }
  0x1a   :  { %88 = vperm.xlu0 %983, %v58_v27   ;;  %v75_v43 = vld [vmem:[%s1348_s3 + $0x98] sm:$0xff]  ;;  %v651_v44 = vld [vmem:[%s1350_s5] sm:$0xff]  ;;  %v652_v45 = vld [vmem:[%s1350_s5 + $0x8] sm:$0xff]  ;;  %p1019_p4 = pnand %p1018_p3, %p1012_p0 }
  0x1b   :  { %93 = vperm.xlu1 %984, %v59_v28   ;;  %v679_v46 = vld [vmem:[%s1351_s6] sm:$0xff]  ;;  %v680_v47 = vld [vmem:[%s1351_s6 + $0x8] sm:$0xff]  ;;  %v653_v48 = vld [vmem:[%s1350_s5 + $0x10] sm:$0xff] }
  0x1c   :  { %899 = vmatmul.mubr.msk.f32.gmra.mrb[10].mxu0 %vm176_vm0, %v47_v25  ;;  %v654_v49 = vld [vmem:[%s1350_s5 + $0x18] sm:$0xff]  ;;  %v681_v50 = vld [vmem:[%s1351_s6 + $0x10] sm:$0xff]  ;;  %v712_v52 = vld [vmem:[%s1353_s8] sm:$0xff] }
  0x1d   :  { %901 = vmatprep.mubr.msk.f32.mxu0 %vm176_vm0, %v48_v26  ;;  %v682_v51 = vld [vmem:[%s1351_s6 + $0x18] sm:$0xff]  ;;  %v458_v53 = vld [vmem:[%s1349_s4] sm:$0xff] }
  0x1e   :  { %98 = vperm.xlu0 %983, %v60_v31   ;;  %929 = vmatprep.mubr.msk.f32.mxu1 %vm466_vm1, %v458_v53 }
  0x1f   :  { %103 = vperm.xlu1 %984, %v61_v32  }
  0x20   :  { %902 = vmatmul.mubr.msk.f32.gmra.mrb[12].mxu0 %vm176_vm0, %v49_v29 }
  0x21   :  { %904 = vmatprep.mubr.msk.f32.mxu0 %vm176_vm0, %v50_v30 }
  0x22   :  { %108 = vperm.xlu0 %983, %v62_v35  }
  0x23   :  { %113 = vperm.xlu1 %984, %v63_v36  }
  0x24   :  { %905 = vmatmul.mubr.msk.f32.gmra.mrb[14].mxu0 %vm176_vm0, %v51_v33 }
  0x25   :  { %907 = vmatprep.mubr.msk.f32.mxu0 %vm176_vm0, %v52_v34 }
  0x26   :  { %158 = vperm.xlu0 %983, %v72_v39  }
  0x27   :  { %163 = vperm.xlu1 %984, %v73_v40  }
  0x28   :  { %908 = vmatmul.mubr.msk.f32.gmra.mrb[16].mxu0 %vm176_vm0, %v53_v37 }
  0x29   :  { %910 = vmatprep.mubr.msk.f32.mxu0 %vm176_vm0, %v54_v38 }
  0x2a   :  { %168 = vperm.xlu0 %983, %v74_v42  }
  0x2b   :  { %173 = vperm.xlu1 %984, %v75_v43  }
  0x2c   :  { %911 = vmatmul.mubr.msk.f32.gmra.mrb[18].mxu0 %vm176_vm0, %v55_v41 }
  0x2e   :  { %657 = vperm.xlu0 %983, %v651_v44  }
  0x2f   :  { %662 = vperm.xlu1 %984, %v652_v45  }
  0x32   :  { %685 = vperm.xlu0 %983, %v679_v46  }
  0x33   :  { %690 = vperm.xlu1 %984, %v680_v47  }
  0x36   :  { %667 = vperm.xlu0 %983, %v653_v48  }
  0x37   :  { %672 = vperm.xlu1 %984, %v654_v49   ;;  %v601_v49 = vstv %s1345_s0 }
  0x3a   :  { %695 = vperm.xlu0 %983, %v681_v50  }
  0x3b   :  { %700 = vperm.xlu1 %984, %v682_v51  }
  0x3e   :  { %715 = vperm.xlu0 %983, %v712_v52  }
  0x83   :  { %v119_v55 = vpop.permute.xlu0 %118 }
  0x84   :  { %v129_v54 = vpop.permute.xlu1 %128 }
  0x87   :  { %v124_v57 = vpop.permute.xlu0 %123 }
  0x88   :  { %v134_v56 = vpop.permute.xlu1 %133 }
  0x8b   :  { %v139_v59 = vpop.permute.xlu0 %138 }
  0x8c   :  { %v144_v58 = vpop.permute.xlu1 %143 }
  0x91   :  { %v149_v62 = vpop.permute.xlu0 %148 }
  0x92   :  { %v154_v60 = vpop.permute.xlu1 %153 }
  0x95   :  { %v79_v3 = vpop.permute.xlu0 %78 }
  0x96   :  { %v84_v2 = vpop.permute.xlu1 %83 }
  0x99   :  { %v89_v8 = vpop.permute.xlu0 %88 }
  0x9a   :  { %v94_v6 = vpop.permute.xlu1 %93 }
  0x9d   :  { %v99_v15 = vpop.permute.xlu0 %98 }
  0x9e   :  { %v104_v13 = vpop.permute.xlu1 %103 }
  0xa1   :  { %v1273_v27 = vpop.permute.xlu0 %108 }
  0xa2   :  { %v1271_v23 = vpop.permute.xlu1 %113 }
  0xa5   :  { %v159_v45 = vpop.permute.xlu0 %158 }
  0xa6   :  { %v164_v41 = vpop.permute.xlu1 %163 }
  0xdb   :  { %v885_v61 = vpop.f32.mrb[0].mxu0 }
  0xdc   :  { %v303_v63 = vpop.f32.mrb[1].mxu0  ;;  %v309_v24 = vadd.f32 %v885_v61, %v84_v2 }
  0xdd   :  { %v304_v28 = vadd.f32 %v303_v63, %v79_v3 }
  0xde   :  { %v403_v35 = vmul.f32 0.1, %v309_v24 }
  0xdf   :  { %v888_v0 = vpop.f32.mrb[2].mxu0  ;;  %v402_v38 = vmul.f32 0.1, %v304_v28 }
  0xe0   :  { %v313_v1 = vpop.f32.mrb[3].mxu0  ;;  %v1275_v31 = vadd.f32 %v888_v0, %v94_v6  ;;  %v411_v51 = vmax.f32 %v309_v24, %v403_v35 }
  0xe1   :  { %v1277_v33 = vadd.f32 %v313_v1, %v89_v8 }
  0xe2   :  { %v405_v42 = vmul.f32 0.1, %v1275_v31 }
  0xe3   :  { %v891_v4 = vpop.f32.mrb[4].mxu0  ;;  %v404_v46 = vmul.f32 0.1, %v1277_v33 }
  0xe4   :  { %v323_v5 = vpop.f32.mrb[5].mxu0  ;;  %v1281_v47 = vadd.f32 %v891_v4, %v104_v13  ;;  %v169_v13 = vpop.permute.xlu0 %168 }
  0xe5   :  { %v1286_v52 = vadd.f32 %v323_v5, %v99_v15  ;;  %v412_v0 = vmax.f32 %v1277_v33, %v404_v46  ;;  %v174_v5 = vpop.permute.xlu1 %173 }
  0xe6   :  { %v407_v1 = vmul.f32 0.1, %v1281_v47 }
  0xe7   :  { %v1267_v7 = vpop.f32.mrb[6].mxu0  ;;  %v406_v6 = vmul.f32 0.1, %v1286_v52 }
  0xe8   :  { %v1269_v9 = vpop.f32.mrb[7].mxu0 }
  0xeb   :  { %v897_v10 = vpop.f32.mrb[8].mxu0 }
  0xec   :  { %v349_v11 = vadd.f32 %v897_v10, %v124_v57  ;;  %v343_v12 = vpop.f32.mrb[9].mxu0 }
  0xed   :  { %v344_v14 = vadd.f32 %v343_v12, %v119_v55 }
  0xee   :  { %v419_v16 = vmul.f32 0.5, %v349_v11 }
  0xef   :  { %v418_v17 = vmul.f32 0.5, %v344_v14  ;;  %v900_v18 = vpop.f32.mrb[10].mxu0 }
  0xf0   :  { %985 = vtanh.f32 %v419_v16  ;;  %v359_v19 = vadd.f32 %v900_v18, %v134_v56  ;;  %v353_v20 = vpop.f32.mrb[11].mxu0  ;;  %v410_v56 = vmax.f32 %v304_v28, %v402_v38  ;;  %v339_v18 = vadd.f32 %v1267_v7, %v1271_v23 }
  0xf1   :  { %987 = vtanh.f32 %v418_v17  ;;  %v354_v21 = vadd.f32 %v353_v20, %v129_v54  ;;  %v415_v7 = vmax.f32 %v1281_v47, %v407_v1 }
  0xf2   :  { %v421_v22 = vmul.f32 0.5, %v359_v19  ;;  %v409_v23 = vmul.f32 0.1, %v339_v18 }
  0xf3   :  { %v420_v25 = vmul.f32 0.5, %v354_v21  ;;  %v903_v26 = vpop.f32.mrb[12].mxu0 }
  0xf4   :  { %989 = vtanh.f32 %v421_v22  ;;  %v369_v29 = vadd.f32 %v903_v26, %v144_v58  ;;  %v363_v30 = vpop.f32.mrb[13].mxu0  ;;  %v334_v22 = vadd.f32 %v1269_v9, %v1273_v27  ;;  %v414_v9 = vmax.f32 %v1286_v52, %v406_v6  ;;  %v461_v6 = vld [vmem:[%s1349_s4 + $0x18] sm:$0xff] }
  0xf5   :  { %991 = vtanh.f32 %v420_v25  ;;  %v364_v32 = vadd.f32 %v363_v30, %v139_v59 }
  0xf6   :  { %v423_v34 = vmul.f32 0.5, %v369_v29  ;;  %v408_v27 = vmul.f32 0.1, %v334_v22 }
  0xf7   :  { %v422_v36 = vmul.f32 0.5, %v364_v32  ;;  %v906_v37 = vpop.f32.mrb[14].mxu0 }
  0xf8   :  { %993 = vtanh.f32 %v423_v34  ;;  %v379_v39 = vadd.f32 %v906_v37, %v154_v60  ;;  %v373_v40 = vpop.f32.mrb[15].mxu0  ;;  %v413_v60 = vmax.f32 %v1275_v31, %v405_v42  ;;  %v416_v46 = vmax.f32 %v334_v22, %v408_v27 }
  0xf9   :  { %995 = vtanh.f32 %v422_v36  ;;  %v374_v43 = vadd.f32 %v373_v40, %v149_v62 }
  0xfa   :  { %v986_v44 = vpop.eup %985  ;;  %v425_v48 = vmul.f32 0.5, %v379_v39 }
  0xfb   :  { %v988_v50 = vpop.eup %987  ;;  %v435_v53 = vadd.f32 1.0, %v986_v44  ;;  %v424_v54 = vmul.f32 0.5, %v374_v43  ;;  %v909_v55 = vpop.f32.mrb[16].mxu0  ;;  %v417_v43 = vmax.f32 %v339_v18, %v409_v23 }
  0xfc   :  { %v434_v57 = vadd.f32 1.0, %v988_v50  ;;  %997 = vtanh.f32 %v425_v48  ;;  %v1288_v58 = vadd.f32 %v909_v55, %v164_v41  ;;  %v383_v59 = vpop.f32.mrb[17].mxu0 }
  0xfd   :  { %v443_v61 = vmul.f32 0.5, %v435_v53  ;;  %999 = vtanh.f32 %v424_v54  ;;  %v384_v62 = vadd.f32 %v383_v59, %v159_v45 }
  0xfe   :  { %v990_v63 = vpop.eup %989  ;;  %v442_v2 = vmul.f32 0.5, %v434_v57  ;;  %v603_v3 = vsub.f32 %v1288_v58, %v601_v49 }
  0xff   :  { %v992_v4 = vpop.eup %991  ;;  %v437_v8 = vadd.f32 1.0, %v990_v63  ;;  %v602_v10 = vsub.f32 %v384_v62, %v601_v49  ;;  %v912_v11 = vpop.f32.mrb[18].mxu0  ;;  %v451_v12 = vmul.f32 %v443_v61, %v411_v51 }
 0x100   :  { %v436_v14 = vadd.f32 1.0, %v992_v4  ;;  %1001 = vtanh.f32 %v603_v3  ;;  %v399_v15 = vadd.f32 %v912_v11, %v174_v5  ;;  %v393_v16 = vpop.f32.mrb[19].mxu0  ;;  %v450_v17 = vmul.f32 %v442_v2, %v410_v56  ;;  %v460_v2 = vld [vmem:[%s1349_s4 + $0x10] sm:$0xff]  ;;  %v462_v11 = vld [vmem:[%s1349_s4 + $0x20] sm:$0xff] }
 0x101   :  { %v445_v19 = vmul.f32 0.5, %v437_v8  ;;  %1003 = vtanh.f32 %v602_v10  ;;  %v394_v20 = vadd.f32 %v393_v16, %v169_v13 }
 0x102   :  { %v994_v21 = vpop.eup %993  ;;  %v444_v24 = vmul.f32 0.5, %v436_v14  ;;  %v605_v25 = vsub.f32 %v399_v15, %v601_v49  ;;  %v956_v26 = vpack.c.bf16 %v451_v12, %v450_v17  ;;  %v463_v14 = vld [vmem:[%s1349_s4 + $0x28] sm:$0xff]  ;;  %v464_v17 = vld [vmem:[%s1349_s4 + $0x30] sm:$0xff] }
 0x103   :  { %v996_v28 = vpop.eup %995  ;;  %v439_v29 = vadd.f32 1.0, %v994_v21  ;;  %v604_v30 = vsub.f32 %v394_v20, %v601_v49  ;;  %v453_v31 = vmul.f32 %v445_v19, %v413_v60 }
 0x104   :  { %v438_v32 = vadd.f32 1.0, %v996_v28  ;;  %1005 = vtanh.f32 %v605_v25  ;;  %957 = vmatprep.subr.bf16.mxu1 %v956_v26  ;;  %v452_v33 = vmul.f32 %v444_v24, %v412_v0 }
 0x105   :  { %v447_v34 = vmul.f32 0.5, %v439_v29  ;;  %1007 = vtanh.f32 %v604_v30  ;;  %959 = vmatpush3.bf16.msra.mxu1 %v956_v26 }
 0x106   :  { %v998_v35 = vpop.eup %997  ;;  %v446_v36 = vmul.f32 0.5, %v438_v32  ;;  %v960_v37 = vpack.c.bf16 %v453_v31, %v452_v33 }
 0x107   :  { %v1000_v38 = vpop.eup %999  ;;  %v441_v39 = vadd.f32 1.0, %v998_v35  ;;  %v455_v40 = vmul.f32 %v447_v34, %v415_v7 }
 0x108   :  { %v440_v41 = vadd.f32 1.0, %v1000_v38  ;;  %961 = vmatprep.subr.bf16.mxu1 %v960_v37  ;;  %v454_v42 = vmul.f32 %v446_v36, %v414_v9  ;;  %v1036_v38 = vmov 0.0|0.0  }
 0x109   :  { %v449_v44 = vmul.f32 0.5, %v441_v39  ;;  %963 = vmatpush3.bf16.msra.mxu1 %v960_v37  ;;  %v1038_v39 = vmov 0.0  }
 0x10a   :  { %v1002_v45 = vpop.eup %1001  ;;  %v448_v47 = vmul.f32 0.5, %v440_v41  ;;  %v964_v48 = vpack.c.bf16 %v455_v40, %v454_v42  ;;  %v663_v40 = vpop.permute.xlu1 %662 }
 0x10b   :  { %v1004_v49 = vpop.eup %1003  ;;  %v611_v50 = vmul.f32 %v1002_v45, %v1288_v58  ;;  %v457_v51 = vmul.f32 %v449_v44, %v417_v43  ;;  %v459_v58 = vld [vmem:[%s1349_s4 + $0x8] sm:$0xff]  ;;  %v658_v41 = vpop.permute.xlu0 %657 }
 0x10c   :  { %v610_v52 = vmul.f32 %v1004_v49, %v384_v62  ;;  %965 = vmatprep.subr.bf16.mxu1 %v964_v48  ;;  %v456_v53 = vmul.f32 %v448_v47, %v416_v46 }
 0x10d   :  { %v626_v54 = vmul.f32 %v611_v50, %v611_v50  ;;  %967 = vmatpush3.bf16.msra.mxu1 %v964_v48 }
 0x10e   :  { %v1006_v55 = vpop.eup %1005  ;;  %v614_v56 = vadd.f32 %v611_v50, %v610_v52  ;;  %v625_v57 = vmul.f32 %v610_v52, %v610_v52  ;;  %v968_v59 = vpack.c.bf16 %v457_v51, %v456_v53  ;;  %v691_v42 = vpop.permute.xlu1 %690 }
 0x10f   :  { %v1008_v60 = vpop.eup %1007  ;;  %v613_v63 = vmul.f32 %v1006_v55, %v399_v15  ;;  %v686_v44 = vpop.permute.xlu0 %685 }
 0x110   :  { %v629_v61 = vadd.f32 %v626_v54, %v625_v57  ;;  %v612_v0 = vmul.f32 %v1008_v60, %v394_v20  ;;  %969 = vmatprep.subr.bf16.mxu1 %v968_v59  ;;  %v465_v20 = vld [vmem:[%s1349_s4 + $0x38] sm:$0xff] }
 0x111   :  { %971 = vmatpush3.bf16.msra.mxu1 %v968_v59  ;;  %v628_v3 = vmul.f32 %v613_v63, %v613_v63 }
 0x112   :  { %v615_v1 = vadd.f32 %v614_v56, %v612_v0  ;;  %v627_v62 = vmul.f32 %v612_v0, %v612_v0  ;;  %972 = vmatprep.subr.bf16.mxu1 %v1036_v38  ;;  %v673_v49 = vpop.permute.xlu1 %672 }
 0x113   :  { %v668_v51 = vpop.permute.xlu0 %667 }
 0x114   :  { %v616_v4 = vadd.f32 %v615_v1, %v613_v63  ;;  %v630_v5 = vadd.f32 %v629_v61, %v627_v62  ;;  %930 = vmatmul.mubr.msk.f32.vlgmr.msra.gmra.mrb[0].mxu1 %vm466_vm1, %v459_v58 }
 0x115   :  { %932 = vmatprep.mubr.msk.f32.mxu1 %vm466_vm1, %v460_v2 }
 0x116   :  { %v617_v8 = vrot.slane %v616_v4, 4  ;;  %v631_v10 = vadd.f32 %v630_v5, %v628_v3 }
 0x117   :  { %v696_v1 = vpop.permute.xlu0 %695 }
 0x118   :  { %v618_v12 = vadd.f32 %v617_v8, %v616_v4  ;;  %v632_v13 = vrot.slane %v631_v10, 4  ;;  %933 = vmatmul.mubr.msk.f32.gmra.mrb[2].mxu1 %vm466_vm1, %v461_v6 }
 0x119   :  { %935 = vmatprep.mubr.msk.f32.mxu1 %vm466_vm1, %v462_v11 }
 0x11a   :  { %v619_v15 = vrot.slane %v618_v12, 2  ;;  %v633_v16 = vadd.f32 %v632_v13, %v631_v10 }
 0x11b   :  { %v716_v13 = vpop.permute.xlu0 %715 }
 0x11c   :  { %v620_v18 = vadd.f32 %v619_v15, %v618_v12  ;;  %v634_v19 = vrot.slane %v633_v16, 2  ;;  %936 = vmatmul.mubr.msk.f32.gmra.mrb[4].mxu1 %vm466_vm1, %v463_v14  ;;  %v707_v12 = vld [vmem:[%s1352_s7] sm:$0xff] }
 0x11d   :  { %938 = vmatprep.mubr.msk.f32.mxu1 %vm466_vm1, %v464_v17 }
 0x11e   :  { %v621_v21 = vrot.slane %v620_v18, 1  ;;  %v635_v22 = vadd.f32 %v634_v19, %v633_v16 }
 0x120   :  { %v622_v24 = vadd.f32 %v621_v21, %v620_v18  ;;  %v636_v25 = vrot.slane %v635_v22, 1  ;;  %939 = vmatmul.mubr.msk.f32.gmra.mrb[6].mxu1 %vm466_vm1, %v465_v20 }
 0x121   :  { %949 = vmatprep.mubr.msk.f32.mxu1 %vm1037_vm2, %v1038_v39 }
 0x122   :  { %v624_v26 = vmul.f32 0.03125, %v622_v24  ;;  %v637_v28 = vadd.f32 %v636_v25, %v635_v22 }
 0x124   :  { %v638_v29 = vmul.f32 0.03125, %v637_v28  ;;  %v639_v30 = vmul.f32 %v624_v26, %v624_v26  ;;  %v643_v31 = vsub.f32 %v612_v0, %v624_v26  ;;  %v642_v32 = vsub.f32 %v611_v50, %v624_v26 }
 0x125   :  { %v641_v33 = vsub.f32 %v610_v52, %v624_v26  ;;  %v644_v7 = vsub.f32 %v613_v63, %v624_v26  ;;  %v701_v63 = vpop.permute.xlu1 %700 }
 0x126   :  { %v640_v23 = vsub.f32 %v638_v29, %v639_v30 }
 0x128   :  { %v645_v34 = vadd.f32 1e-05, %v640_v23 }
 0x12a   :  { %1009 = vrsqrt.f32 %v645_v34 }
 0x134   :  { %v1010_v35 = vpop.eup %1009 }
 0x135   :  { %v648_v9 = vmul.f32 %v1010_v35, %v642_v32  ;;  %v647_v27 = vmul.f32 %v1010_v35, %v641_v33  ;;  %v650_v36 = vmul.f32 %v1010_v35, %v644_v7  ;;  %v649_v37 = vmul.f32 %v1010_v35, %v643_v31 }
 0x137   :  { %v676_v48 = vmul.f32 %v663_v40, %v648_v9  ;;  %v675_v50 = vmul.f32 %v658_v41, %v647_v27  ;;  %v678_v56 = vmul.f32 %v673_v49, %v650_v36  ;;  %v677_v60 = vmul.f32 %v668_v51, %v649_v37 }
 0x139   :  { %v704_v54 = vadd.f32 %v691_v42, %v676_v48  ;;  %v703_v59 = vadd.f32 %v686_v44, %v675_v50  ;;  %v706_v2 = vadd.f32 %v701_v63, %v678_v56  ;;  %v705_v6 = vadd.f32 %v696_v1, %v677_v60 }
 0x1e7   :  { %v931_v43 = vpop.f32.mrb[0].mxu1 }
 0x1e8   :  { %v557_v45 = vpop.f32.mrb[1].mxu1 }
 0x1eb   :  { %v934_v46 = vpop.f32.mrb[2].mxu1 }
 0x1ec   :  { %v567_v47 = vpop.f32.mrb[3].mxu1 }
 0x1ef   :  { %v937_v52 = vpop.f32.mrb[4].mxu1 }
 0x1f0   :  { %v597_v53 = vmax.f32 %v931_v43, %v937_v52  ;;  %v577_v55 = vpop.f32.mrb[5].mxu1 }
 0x1f1   :  { %v596_v57 = vmax.f32 %v557_v45, %v577_v55 }
 0x1f2   :  { %v709_v61 = vmul.f32 %v704_v54, %v597_v53 }
 0x1f3   :  { %v708_v0 = vmul.f32 %v703_v59, %v596_v57  ;;  %v940_v58 = vpop.f32.mrb[6].mxu1 }
 0x1f4   :  { %v599_v62 = vmax.f32 %v934_v46, %v940_v58  ;;  %v587_v3 = vpop.f32.mrb[7].mxu1 }
 0x1f5   :  { %v973_v4 = vpack.c.bf16 %v709_v61, %v708_v0  ;;  %v598_v5 = vmax.f32 %v567_v47, %v587_v3 }
 0x1f6   :  { %v711_v8 = vmul.f32 %v706_v2, %v599_v62 }
 0x1f7   :  { %v710_v10 = vmul.f32 %v705_v6, %v598_v5  ;;  %974 = vmatpush3.bf16.msra.mxu1 %v973_v4 }
 0x1f8   :  { %975 = vmatprep.subr.bf16.mxu1 %v1036_v38 }
 0x1f9   :  { %v976_v11 = vpack.c.bf16 %v711_v8, %v710_v10 }
 0x1fb   :  { %977 = vmatpush3.bf16.msra.mxu1 %v976_v11 }
 0x1fe   :  { %950 = vmatmul.mubr.msk.f32.vlgmr.msra.gmra.mrb[8].mxu1 %vm718_vm3, %v707_v12 }
 0x2d1   :  { %v788_v14 = vpop.f32.mrb[8].mxu1 }
 0x2d2   :  { %v789_v15 = vadd.f32 %v788_v14, %v716_v13  ;;  %v951_v16 = vpop.f32.mrb[9].mxu1 }
 0x2d4   :  { %792 = vst [vmem:[#allocation3] sm:$0xff] %v789_v15 }
 0x2d5   :  { %1022 = shalt.err (!%p1019_p4)
}
 0x2d6   :  { %s1023_s7 = scalar_lea.hbm %s1354_s9, 128 }
 0x2d7   :  { %p1024_p5 = scmp.ne.s32.totalorder %s1354_s9, %s1023_s7  ;;  %p1027_p6 = scmp.lt.u32.totalorder %s1023_s7, %s1354_s9 }
 0x2d9   :  { %p1029_p7 = pnand %p1027_p6, %p1024_p5 }
 0x2db   :  { %1032 = shalt.err (!%p1029_p7)
}
 0x2dc   :  { %802 = dma.vmem_to_hbm [thread:$0]  %s800_s13, 128, %s1354_s9, [#allocation4]  }
 0x2dd   :  { %1033 = dma.done.wait [#allocation4], 128  }
 0x2de   :  { %1034 = vsyncadd [#allocation4], 4294967168 }
 0x2df   :  { %806 = vsyncpa [#allocation4], 1 }

</bundles_post_ra>
